<compile_context>
chip_gen: v7x
topology: tpu7x:2x2x1
jax: 0.10.0
libtpu: 0.0.40
codegen_flags: <defaults>
</compile_context>

<pallas_src>
import math

import jax
import jax.numpy as jnp
from jax import lax
from jax.experimental import pallas as pl
from jax.experimental.pallas import tpu as pltpu


# ---------------------------------------------------------------------------
# helpers
# ---------------------------------------------------------------------------
def _vmem_limit_bytes():
    cap = 128 * 1024 * 1024
    try:
        cap = int(pltpu.get_tpu_info().vmem_capacity_bytes)
    except Exception:
        pass
    # keep headroom for compiler-internal scratch (matters on v7x's 64 MiB VMEM)
    return min(64 * 1024 * 1024, (cap * 3) // 4)


def _choose_tile(n, cap=512):
    """Largest divisor of n that is a multiple of 8 and <= cap; else n (full dim)."""
    best = None
    d = 8
    while d <= min(n, cap):
        if n % d == 0:
            best = d
        d += 8
    return best if best is not None else n


def _choose_out_tile(d_in, d_out, budget=8 * 1024 * 1024):
    """Tile d_out (multiple of 128) only when the whole weight is large."""
    if d_in * d_out * 4 <= budget:
        return d_out
    best = None
    c = 128
    while c <= d_out:
        if d_out % c == 0 and d_in * c * 4 <= budget:
            best = c
        c += 128
    return best if best is not None else d_out


def _block_spec(shape, index_map, buffers=None):
    """BlockSpec with optional pipeline_mode=pl.Buffered(k); falls back safely."""
    if buffers is not None:
        try:
            return pl.BlockSpec(shape, index_map,
                                pipeline_mode=pl.Buffered(buffers))
        except Exception:
            pass
    return pl.BlockSpec(shape, index_map)


def _cost(flops, transcendentals, bytes_accessed):
    try:
        return pl.CostEstimate(flops=int(flops),
                               transcendentals=int(transcendentals),
                               bytes_accessed=int(bytes_accessed))
    except Exception:
        return None


def _choose_q_tile(sq, sk, dim_q, num_heads, has_mask, return_weights, vmem_limit):
    tq = _choose_tile(sq)
    # K + V resident whole; be conservative and assume they are double-buffered.
    kv_bytes = 2 * (2 * sk * dim_q * 4)
    budget = max(vmem_limit - kv_bytes - (4 << 20), 4 << 20)

    def step_bytes(t):
        b = 2 * t * dim_q * 4              # q tile (double-buffered, f32)
        b += 2 * t * dim_q * 4             # att-out tile (double-buffered)
        b += t * dim_q * 4                 # f32 scratch accumulator
        b += 3 * t * sk * 4                # in-kernel f32 temporaries (s, e, att)
        if has_mask:
            b += 2 * t * sk * 1            # int8 mask tile (double-buffered)
        if return_weights:
            b += 2 * num_heads * t * sk * 4  # weights output tile (double-buffered)
        return b

    while step_bytes(tq) > budget and tq % 16 == 0 and tq >= 16:
        tq //= 2
    return tq


# ---------------------------------------------------------------------------
# Pallas kernels
# ---------------------------------------------------------------------------
def _linear_kernel(x_ref, w_ref, b_ref, o_ref):
    # y = x @ W (W stored pre-transposed as (d_in, d_out)) + b, bf16 MXU / f32 acc
    x = x_ref[...].astype(jnp.bfloat16)
    w = w_ref[...].astype(jnp.bfloat16)
    y = jnp.dot(x, w, preferred_element_type=jnp.float32)
    o_ref[...] = (y + b_ref[...]).astype(o_ref.dtype)


def pallas_linear(x2d, w_t, b):
    """x2d: (M, d_in), w_t: (d_in, d_out), b: (d_out,) -> (M, d_out)."""
    M, d_in = x2d.shape
    d_out = w_t.shape[1]
    tm = _choose_tile(M)
    tn = _choose_out_tile(d_in, d_out)
    nj = d_out // tn
    # single-buffer the invariant weight/bias only when their block index is constant
    wb_buffers = 1 if nj == 1 else None

    return pl.pallas_call(
        _linear_kernel,
        out_shape=jax.ShapeDtypeStruct((M, d_out), x2d.dtype),
        grid=(M // tm, nj),
        in_specs=[
            pl.BlockSpec((tm, d_in), lambda i, j: (i, 0)),
            _block_spec((d_in, tn), lambda i, j: (0, j), buffers=wb_buffers),
            _block_spec((1, tn), lambda i, j: (0, j), buffers=wb_buffers),
        ],
        out_specs=pl.BlockSpec((tm, tn), lambda i, j: (i, j)),
        compiler_params=pltpu.CompilerParams(
            dimension_semantics=("parallel", "parallel"),
            vmem_limit_bytes=_vmem_limit_bytes()),
        cost_estimate=_cost(
            flops=2 * M * d_in * d_out,
            transcendentals=0,
            bytes_accessed=(M * d_in + d_in * d_out + d_out + M * d_out) * 4),
    )(x2d, w_t, b.reshape(1, d_out))


def _make_attn_kernel(num_heads, dim_head, has_mask, return_weights):
    def kernel(*refs):
        i = 0
        q_ref = refs[i]; i += 1
        k_ref = refs[i]; i += 1
        v_ref = refs[i]; i += 1
        m_ref = None
        if has_mask:
            m_ref = refs[i]; i += 1
        o_ref = refs[i]; i += 1
        w_ref = None
        if return_weights:
            w_ref = refs[i]; i += 1
        acc_ref = refs[i]                    # (tq, H*dh) f32 scratch

        q = q_ref[0]                         # (tq, H*dh)
        k = k_ref[0]                         # (Sk, H*dh)
        v = v_ref[0]                         # (Sk, H*dh)
        mask = m_ref[0] if has_mask else None

        scale = jnp.float32(1.0 / math.sqrt(dim_head))
        contract_last = (((1,), (1,)), ((), ()))
        for h in range(num_heads):           # static unroll over heads
            lo = h * dim_head
            q_h = (q[:, lo:lo + dim_head].astype(jnp.float32) * scale
                   ).astype(jnp.bfloat16)
            k_h = k[:, lo:lo + dim_head].astype(jnp.bfloat16)
            v_h = v[:, lo:lo + dim_head].astype(jnp.bfloat16)
            # (tq, Sk) scores; contract the dh axis of both operands (no k.T copy)
            s = lax.dot_general(q_h, k_h, contract_last,
                                preferred_element_type=jnp.float32)
            if mask is not None:
                s = jnp.where(mask != 0, jnp.float32(-1000000000.0), s)
            m_max = jnp.max(s, axis=-1, keepdims=True)
            e = jnp.exp(s - m_max)
            denom = jnp.sum(e, axis=-1, keepdims=True)
            att = e * pl.reciprocal(denom, approx=True)
            if w_ref is not None:
                w_ref[0, h] = att.astype(w_ref.dtype)
            acc_ref[:, lo:lo + dim_head] = jnp.dot(
                att.astype(jnp.bfloat16), v_h,
                preferred_element_type=jnp.float32)
        # single lane-dense (tq, H*dh) store of the PV result
        o_ref[0] = acc_ref[...].astype(o_ref.dtype)

    return kernel


def pallas_cross_attention(q3, k3, v3, mask3, num_heads, dim_head,
                           return_weights=True):
    """q3: (B,Sq,H*dh), k3/v3: (B,Sk,H*dh), mask3: (B,Sq,Sk) int8 or None.

    Returns (att_out (B,Sq,H*dh), att_weights (B,H,Sq,Sk) or None)."""
    B, Sq, dim_q = q3.shape
    Sk = k3.shape[1]
    has_mask = mask3 is not None
    vmem_limit = _vmem_limit_bytes()
    tq = _choose_q_tile(Sq, Sk, dim_q, num_heads, has_mask, return_weights,
                        vmem_limit)
    # TODO(synk): when B == 1 on v7x, lead with the q-tile axis so megacore sharding
    #             splits query tiles instead of batches.
    grid = (B, Sq // tq)

    in_specs = [
        pl.BlockSpec((1, tq, dim_q), lambda b, qi: (b, qi, 0)),
        _block_spec((1, Sk, dim_q), lambda b, qi: (b, 0, 0), buffers=1),
        _block_spec((1, Sk, dim_q), lambda b, qi: (b, 0, 0), buffers=1),
    ]
    args = [q3, k3, v3]
    if has_mask:
        in_specs.append(pl.BlockSpec((1, tq, Sk), lambda b, qi: (b, qi, 0)))
        args.append(mask3)

    out_shape = [jax.ShapeDtypeStruct((B, Sq, dim_q), q3.dtype)]
    out_specs = [pl.BlockSpec((1, tq, dim_q), lambda b, qi: (b, qi, 0))]
    if return_weights:
        out_shape.append(
            jax.ShapeDtypeStruct((B, num_heads, Sq, Sk), jnp.float32))
        out_specs.append(
            pl.BlockSpec((1, num_heads, tq, Sk), lambda b, qi: (b, 0, qi, 0)))

    kernel = _make_attn_kernel(num_heads, dim_head, has_mask, return_weights)

    bytes_accessed = (q3.size + k3.size + v3.size) * q3.dtype.itemsize
    bytes_accessed += B * Sq * dim_q * q3.dtype.itemsize
    if has_mask:
        bytes_accessed += mask3.size * mask3.dtype.itemsize
    if return_weights:
        bytes_accessed += B * num_heads * Sq * Sk * 4

    results = pl.pallas_call(
        kernel,
        out_shape=tuple(out_shape),
        grid=grid,
        in_specs=in_specs,
        out_specs=tuple(out_specs),
        scratch_shapes=[pltpu.VMEM((tq, dim_q), jnp.float32)],
        compiler_params=pltpu.CompilerParams(
            dimension_semantics=("parallel", "parallel"),
            vmem_limit_bytes=vmem_limit),
        cost_estimate=_cost(
            flops=4 * B * num_heads * Sq * Sk * dim_head,
            transcendentals=B * num_heads * Sq * Sk,
            bytes_accessed=bytes_accessed),
    )(*args)
    if return_weights:
        return results[0], results[1]
    return results[0], None


# ---------------------------------------------------------------------------
# Module wrapper (parameter setup + glue in plain JAX)
# ---------------------------------------------------------------------------
class CrossMultiAttention:
    def __init__(self, dim_q, dim_kv, num_heads, dim_out=256,
                 att_drop=0.0, lin_drop=0.0,
                 lin_before_qkv=True, lin_after_att=True, *, key):
        assert dim_q % num_heads == 0, \
            "The Query dimension must be divisible by the Number of Heads"
        self.dim_q = dim_q
        self.dim_kv = dim_kv
        self.num_heads = num_heads
        self.dim_head = dim_q // num_heads
        self.dim_out = dim_out
        self.lin_before_qkv = lin_before_qkv
        self.lin_after_att = lin_after_att
        # TODO(synk): att_drop / lin_drop dropout not implemented; identity at 0.0.

        def init_linear(k, fan_in, fan_out):
            kw, kb = jax.random.split(k)
            bound = 1.0 / math.sqrt(fan_in)
            # store the weight pre-transposed as (d_in, d_out): no per-call w.T
            w_t = jax.random.uniform(kw, (fan_in, fan_out), jnp.float32, -bound, bound)
            b = jax.random.uniform(kb, (fan_out,), jnp.float32, -bound, bound)
            return w_t, b

        k1, k2, k3, k4 = jax.random.split(key, 4)
        if lin_before_qkv:
            self.W_q = init_linear(k1, dim_q, dim_q)
            self.W_k = init_linear(k2, dim_kv, dim_q)
            self.W_v = init_linear(k3, dim_kv, dim_q)
        else:
            self.W_q = self.W_k = self.W_v = None
        self.W_o = init_linear(k4, dim_q, dim_out)

    def _apply_linear(self, x, params):
        w_t, b = params
        B_, S_, d_ = x.shape
        y = pallas_linear(x.reshape(B_ * S_, d_), w_t, b)
        return y.reshape(B_, S_, w_t.shape[1])

    def __call__(self, Q, K, V, att_mask=None, return_weights=True):
        B, Sq, dq = Q.shape
        assert dq == self.dim_q, \
            "The input Query dimension must be the same as dim_q in __init__()"
        Sk = K.shape[1]

        if self.lin_before_qkv:
            Q = self._apply_linear(Q, self.W_q)
            K = self._apply_linear(K, self.W_k)
            V = self._apply_linear(V, self.W_v)
        else:
            assert K.shape[-1] == self.dim_q and V.shape[-1] == self.dim_q

        if att_mask is None:
            mask3 = None
        else:
            # matches torch: permute(0, 2, 1) then broadcast over heads; int8 DMA
            mask3 = jnp.broadcast_to(
                (jnp.transpose(att_mask, (0, 2, 1)) != 0).astype(jnp.int8),
                (B, Sq, Sk))

        att_out, att_w = pallas_cross_attention(
            Q, K, V, mask3, self.num_heads, self.dim_head,
            return_weights=return_weights)

        if self.lin_after_att:
            att_out = self._apply_linear(att_out, self.W_o)
        return att_out, att_w


# ---------------------------------------------------------------------------
# Pure-JAX reference (mirrors the PyTorch module) for sanity checking
# ---------------------------------------------------------------------------
def reference_forward(mod, Q, K, V, att_mask=None):
    def lin(x, p):
        w_t, b = p
        return x @ w_t + b

    if mod.lin_before_qkv:
        Qp, Kp, Vp = lin(Q, mod.W_q), lin(K, mod.W_k), lin(V, mod.W_v)
    else:
        Qp, Kp, Vp = Q, K, V
    B, Sq, _ = Q.shape
    Sk = K.shape[1]
    H, dh = mod.num_heads, mod.dim_head
    q = Qp.reshape(B, Sq, H, dh).transpose(0, 2, 1, 3)
    k = Kp.reshape(B, Sk, H, dh).transpose(0, 2, 1, 3)
    v = Vp.reshape(B, Sk, H, dh).transpose(0, 2, 1, 3)
    scores = jnp.einsum("bhqd,bhkd->bhqk", q, k) / jnp.sqrt(jnp.float32(dh))
    if att_mask is not None:
        m = jnp.transpose(att_mask, (0, 2, 1)).astype(bool)[:, None, :, :]
        scores = jnp.where(m, jnp.float32(-1000000000.0), scores)
    w = jax.nn.softmax(scores, axis=-1)
    o = jnp.einsum("bhqk,bhkd->bhqd", w, v)
    o = o.transpose(0, 2, 1, 3).reshape(B, Sq, H * dh)
    if mod.lin_after_att:
        o = lin(o, mod.W_o)
    return o, w


if __name__ == "__main__":
    key = jax.random.PRNGKey(0)
    kq, kk, kv, km, kparams = jax.random.split(key, 5)

    B, Sq, Skv = 2, 8, 16
    dim_q, dim_kv, num_heads, dim_out = 32, 24, 4, 256
    Q = jax.random.normal(kq, (B, Sq, dim_q), jnp.float32)
    K = jax.random.normal(kk, (B, Skv, dim_kv), jnp.float32)
    V = jax.random.normal(kv, (B, Skv, dim_kv), jnp.float32)
    # att_mask as the torch module expects it (pre-permute): (B, Sk, Sq)
    att_mask = jax.random.bernoulli(km, 0.3, (B, Skv, Sq)).astype(jnp.float32)

    mod = CrossMultiAttention(dim_q, dim_kv, num_heads, dim_out=dim_out, key=kparams)

    # ---- path 1: no mask (unmasked kernel variant) ----
    out, att_w = mod(Q, K, V, att_mask=None)
    out = jax.block_until_ready(out)
    att_w = jax.block_until_ready(att_w)
    ref_out, ref_w = reference_forward(mod, Q, K, V, att_mask=None)
    assert out.shape == (B, Sq, dim_out)
    assert att_w.shape == (B, num_heads, Sq, Skv)
    # bf16 MXU operands + approx reciprocal -> loosened tolerances vs f32 reference
    assert jnp.allclose(out, ref_out, atol=3e-2, rtol=3e-2)
    assert jnp.allclose(att_w, ref_w, atol=1e-2, rtol=1e-2)

    # ---- path 2: with mask (masked kernel variant) ----
    out_m, att_w_m = mod(Q, K, V, att_mask=att_mask)
    out_m = jax.block_until_ready(out_m)
    att_w_m = jax.block_until_ready(att_w_m)
    ref_out_m, ref_w_m = reference_forward(mod, Q, K, V, att_mask=att_mask)
    assert jnp.allclose(out_m, ref_out_m, atol=3e-2, rtol=3e-2)
    assert jnp.allclose(att_w_m, ref_w_m, atol=1e-2, rtol=1e-2)

    print("KERNEL_OK")
</pallas_src>

<mosaic_0001>
module attributes {stable_mosaic.version = 11 : i64} {
  func.func @_linear_kernel(%arg0: i32, %arg1: i32, %arg2: memref<16x32xf32, #tpu.memory_space<vmem>>, %arg3: memref<32x32xf32, #tpu.memory_space<vmem>>, %arg4: memref<1x32xf32, #tpu.memory_space<vmem>>, %arg5: memref<16x32xf32, #tpu.memory_space<vmem>>) attributes {dimension_semantics = [#tpu.dimension_semantics<parallel>, #tpu.dimension_semantics<parallel>], iteration_bounds = array<i64: 1, 1>, scalar_prefetch = 0 : i64, scratch_operands = 0 : i64, tpu.core_type = #tpu.core_type<tc>, window_params = [{transform_indices = @transform_0, window_bounds = array<i64: 16, 32>}, {pipeline_mode = #tpu.pipeline_mode<synchronous>, transform_indices = @transform_1, window_bounds = array<i64: 32, 32>}, {pipeline_mode = #tpu.pipeline_mode<synchronous>, transform_indices = @transform_2, window_bounds = array<i64: 1, 32>}, {transform_indices = @transform_3, window_bounds = array<i64: 16, 32>}]} {
    %c0 = arith.constant 0 : index
    %c0_0 = arith.constant 0 : index
    %0 = vector.load %arg2[%c0, %c0_0] : memref<16x32xf32, #tpu.memory_space<vmem>>, vector<16x32xf32>
    %1 = arith.truncf %0 : vector<16x32xf32> to vector<16x32xbf16>
    %c0_1 = arith.constant 0 : index
    %c0_2 = arith.constant 0 : index
    %2 = vector.load %arg3[%c0_1, %c0_2] : memref<32x32xf32, #tpu.memory_space<vmem>>, vector<32x32xf32>
    %3 = arith.truncf %2 : vector<32x32xf32> to vector<32x32xbf16>
    %cst = arith.constant dense<0.000000e+00> : vector<16x32xf32>
    %4 = tpu.matmul %1, %3, %cst {dimension_numbers = #tpu.dot_dimension_numbers<[1], [0], [0], [1], [0, 0, 1, 1], [], []>} : vector<16x32xbf16>, vector<32x32xbf16>, vector<16x32xf32> -> vector<16x32xf32>
    %c0_3 = arith.constant 0 : index
    %c0_4 = arith.constant 0 : index
    %5 = vector.load %arg4[%c0_3, %c0_4] : memref<1x32xf32, #tpu.memory_space<vmem>>, vector<1x32xf32>
    %6 = vector.broadcast %5 : vector<1x32xf32> to vector<16x32xf32>
    %7 = arith.addf %4, %6 : vector<16x32xf32>
    %c0_5 = arith.constant 0 : index
    %c0_6 = arith.constant 0 : index
    %8 = vector.load %arg5[%c0_5, %c0_6] : memref<16x32xf32, #tpu.memory_space<vmem>>, vector<16x32xf32>
    tpu.vector_store %arg5[%c0_5, %c0_6], %7 {strides = array<i32>} : memref<16x32xf32, #tpu.memory_space<vmem>>, vector<16x32xf32>,
    return
  }
  func.func @transform_0(%arg0: i32, %arg1: i32) -> (i32, i32) {
    %c0_i32 = arith.constant 0 : i32
    %c0_i32_0 = arith.constant 0 : i32
    return %arg0, %c0_i32 : i32, i32
  }
  func.func @transform_1(%arg0: i32, %arg1: i32) -> (i32, i32) {
    %c0_i32 = arith.constant 0 : i32
    %c0_i32_0 = arith.constant 0 : i32
    return %c0_i32, %arg1 : i32, i32
  }
  func.func @transform_2(%arg0: i32, %arg1: i32) -> (i32, i32) {
    %c0_i32 = arith.constant 0 : i32
    %c0_i32_0 = arith.constant 0 : i32
    return %c0_i32, %arg1 : i32, i32
  }
  func.func @transform_3(%arg0: i32, %arg1: i32) -> (i32, i32) {
    %c0_i32 = arith.constant 0 : i32
    return %arg0, %arg1 : i32, i32
  }
}

</mosaic_0001>

<bundles_post_ra>
// kernel: tpu_custom_call.1
= control target key start
LH: loop header
LB: loop body
LE: loop exit
PB: predicated region body
PF: predicated region fallthrough
CT: control target
= control target key end

     0   :  { %8 = vsyncpa [#allocation3], 0  ;;  %s343_s0 = inlined_call_operand.hbm [shape: f32[16,32], index: 0, kind: input, shape index: {}]   ;;  %s344_s1 = inlined_call_operand.hbm [shape: f32[32,32], index: 1, kind: input, shape index: {}]   ;;  %s345_s2 = inlined_call_operand.hbm [shape: f32[1,32], index: 2, kind: input, shape index: {}]   ;;  %s346_s3 = inlined_call_operand.hbm [shape: f32[16,32], index: 3, kind: output, shape index: {}]  }
   0x1   :  { %9 = vsyncpa [#allocation6], 0 }
   0x2   :  { %10 = vsyncpa [#allocation4], 0  ;;  %s251_s12 = smov [#allocation5]   ;;  %s252_s14 = smov [#allocation2]  }
   0x3   :  { %s28_s13 = sshll.u32 %s251_s12, 4  ;;  %s16_s15 = sshll.u32 %s252_s14, 4  ;;  %s29_s13 = int_to_ptr.vmem [resolvable:$true] %s28_s13  ;;  %s279_s15 = int_to_ptr.vmem [resolvable:$true] %s16_s15 }
   0x4   :  { %s157_s18 = scalar_lea.hbm %s344_s1, 512 }
   0x5   :  { %p158_p0 = scmp.ne.s32.totalorder %s344_s1, %s157_s18  ;;  %p161_p1 = scmp.lt.u32.totalorder %s157_s18, %s344_s1 }
   0x7   :  { %p163_p2 = pnand %p161_p1, %p158_p0 }
   0x9   :  { %166 = shalt.err (!%p163_p2)
}
   0xa   :  { %s167_s23 = scalar_lea.vmem %s29_s13, 512  ;;  %p172_p4 = scmp.lt.s32.totalorder %s29_s13, %s29_s13 }
   0xb   :  { %p168_p3 = scmp.ne.s32.totalorder %s29_s13, %s167_s23  ;;  %p173_p5 = scmp.lt.s32.totalorder %s167_s23, %s167_s23 }
   0xd   :  { %p174_p6 = por %p173_p5, %p172_p4 }
   0xf   :  { %p175_p7 = pnand %p174_p6, %p168_p3 }
  0x11   :  { %178 = shalt.err (!%p175_p7)
}
  0x12   :  { %s253_s24 = smov 128   ;;  %s254_s25 = smov 8  }
  0x13   :  { %34 = dma.hbm_to_vmem [thread:$0]  %s344_s1, 512, %s29_s13, [#allocation6], %s253_s24, %s253_s24, %s254_s25  }
  0x14   :  { %s179_s30 = scalar_lea.hbm %s343_s0, 256 }
  0x15   :  { %p180_p8 = scmp.ne.s32.totalorder %s343_s0, %s179_s30  ;;  %p183_p9 = scmp.lt.u32.totalorder %s179_s30, %s343_s0 }
  0x17   :  { %p185_p10 = pnand %p183_p9, %p180_p8 }
  0x19   :  { %188 = shalt.err (!%p185_p10)
}
  0x1a   :  { %s189_s8 = scalar_lea.vmem %s279_s15, 256  ;;  %p194_p12 = scmp.lt.s32.totalorder %s279_s15, %s279_s15 }
  0x1b   :  { %p190_p11 = scmp.ne.s32.totalorder %s279_s15, %s189_s8  ;;  %p195_p13 = scmp.lt.s32.totalorder %s189_s8, %s189_s8 }
  0x1d   :  { %p196_p0 = por %p195_p13, %p194_p12 }
  0x1f   :  { %p197_p1 = pnand %p196_p0, %p190_p11 }
  0x21   :  { %200 = shalt.err (!%p197_p1)
}
  0x22   :  { %22 = dma.hbm_to_vmem [thread:$0]  %s343_s0, 256, %s279_s15, [#allocation3], %s253_s24, %s253_s24, %s254_s25  }
  0x23   :  { %s255_s10 = smov [#allocation7]   ;;  %s201_s14 = scalar_lea.hbm %s345_s2, 16 }
  0x24   :  { %s41_s11 = sshll.u32 %s255_s10, 4  ;;  %p202_p2 = scmp.ne.s32.totalorder %s345_s2, %s201_s14  ;;  %s42_s11 = int_to_ptr.vmem [resolvable:$true] %s41_s11 }
  0x25   :  { %p205_p3 = scmp.lt.u32.totalorder %s201_s14, %s345_s2 }
  0x27   :  { %p207_p4 = pnand %p205_p3, %p202_p2 }
  0x29   :  { %210 = shalt.err (!%p207_p4)
}
  0x2a   :  { %s211_s20 = scalar_lea.vmem %s42_s11, 16  ;;  %s215_s0 = scalar_lea.vmem %s42_s11, 32 }
  0x2b   :  { %p212_p5 = scmp.ne.s32.totalorder %s42_s11, %s211_s20  ;;  %p216_p6 = scmp.lt.s32.totalorder %s42_s11, %s42_s11 }
  0x2c   :  { %p217_p7 = scmp.lt.s32.totalorder %s215_s0, %s211_s20 }
  0x2e   :  { %p218_p8 = por %p217_p7, %p216_p6 }
  0x30   :  { %p219_p9 = pnand %p218_p8, %p212_p5 }
  0x32   :  { %222 = shalt.err (!%p219_p9)
}
  0x33   :  { %44 = dma.hbm_to_vmem [thread:$0]  %s345_s2, 16, %s42_s11, [#allocation6]  }
  0x34   :  { %245 = dma.done.wait [#allocation3], 256  }
  0x35   :  { %246 = vsyncadd [#allocation3], 4294967040 }
  0x36   :  { %247 = dma.done.wait [#allocation6], 528  }
  0x37   :  { %248 = vsyncadd [#allocation6], 4294966768  ;;  %v256_v0 = vmov 0.0   ;;  %vm257_vm0 = vmmov 0   ;;  %v58_v1 = vld [vmem:[#allocation5] sm:$0xff]  ;;  %v59_v2 = vld [vmem:[#allocation5 + $0x8] sm:$0xff] }
  0x38   :  { %141 = vmatprep.subr.bf16.mxu0 %v256_v0  ;;  %145 = vmatprep.mubr.msk.bf16.mxu0 %vm257_vm0, %v256_v0  ;;  %v60_v3 = vld [vmem:[#allocation5 + $0x10] sm:$0xff]  ;;  %v62_v4 = vpack.c.bf16 %v59_v2, %v58_v1  ;;  %v61_v5 = vld [vmem:[#allocation5 + $0x18] sm:$0xff]  ;;  %vm71_vm1 = vcmask 261120   ;;  %v136_v10 = vld [vmem:[#allocation7] ss:$0 sm:$0xff]  ;;  %s258_s2 = smov [#allocation8]  }
  0x39   :  { %v63_v6 = vpack.c.bf16 %v61_v5, %v60_v3  ;;  %v55_v7 = vld [vmem:[#allocation2] sm:$0xff]  ;;  %v56_v8 = vld [vmem:[#allocation2 + $0x8] sm:$0xff]  ;;  %s123_s22 = sshll.u32 %s258_s2, 4  ;;  %s124_s22 = int_to_ptr.vmem [resolvable:$true] %s123_s22 }
  0x3a   :  { %142 = vmatpush3.bf16.msra.mxu0 %v62_v4  ;;  %v57_v9 = vpack.c.bf16 %v56_v8, %v55_v7  ;;  %s223_s23 = scalar_lea.vmem %s124_s22, 256  ;;  %p228_p11 = scmp.lt.s32.totalorder %s124_s22, %s124_s22 }
  0x3b   :  { %143 = vmatprep.subr.bf16.mxu0 %v256_v0  ;;  %p224_p10 = scmp.ne.s32.totalorder %s124_s22, %s223_s23  ;;  %p229_p12 = scmp.lt.s32.totalorder %s223_s23, %s223_s23 }
  0x3d   :  { %p230_p13 = por %p229_p12, %p228_p11 }
  0x3e   :  { %144 = vmatpush3.bf16.msra.mxu0 %v63_v6 }
  0x3f   :  { %p231_p0 = pnand %p230_p13, %p224_p10 }
  0x41   :  { %146 = vmatmul.mubr.msk.bf16.vlgmr.msra.gmra.mrb[0].mxu0 %vm71_vm1, %v57_v9 }
 0x114   :  { %v109_v11 = vpop.f32.mrb[0].mxu0 }
 0x115   :  { %v110_v12 = vadd.f32 %v136_v10, %v109_v11  ;;  %v147_v13 = vpop.f32.mrb[1].mxu0 }
 0x116   :  { %v112_v14 = vpop.f32.mrb[2].mxu0 }
 0x117   :  { %116 = vst.msk [vmem:[#allocation8] sm:$0xff] %vm71_vm1, %v110_v12  ;;  %v113_v15 = vadd.f32 %v136_v10, %v112_v14  ;;  %v148_v16 = vpop.f32.mrb[3].mxu0 }
 0x119   :  { %117 = vst.msk [vmem:[#allocation8 + $0x8] sm:$0xff] %vm71_vm1, %v113_v15 }
 0x11a   :  { %234 = shalt.err (!%p231_p0)
}
 0x11b   :  { %s235_s28 = scalar_lea.hbm %s346_s3, 256 }
 0x11c   :  { %p236_p1 = scmp.ne.s32.totalorder %s346_s3, %s235_s28  ;;  %p239_p2 = scmp.lt.u32.totalorder %s235_s28, %s346_s3 }
 0x11e   :  { %p241_p3 = pnand %p239_p2, %p236_p1 }
 0x120   :  { %244 = shalt.err (!%p241_p3)
}
 0x121   :  { %129 = dma.vmem_to_hbm [thread:$0]  %s124_s22, 256, %s346_s3, [#allocation4], %s253_s24, %s253_s24, %s254_s25  }
 0x122   :  { %249 = dma.done.wait [#allocation4], 256  }
 0x123   :  { %250 = vsyncadd [#allocation4], 4294967040 }
 0x124   :  { %133 = vsyncpa [#allocation3], 1 }
 0x125   :  { %134 = vsyncpa [#allocation6], 1 }
 0x126   :  { %135 = vsyncpa [#allocation4], 1 }

</bundles_post_ra>
